<compile_context>
chip_gen: v7x
topology: tpu7x:2x2x1
jax: 0.10.0
libtpu: 0.0.40
codegen_flags: <defaults>
</compile_context>

<pallas_src>
import functools

import numpy as np

import jax
import jax.numpy as jnp
from jax.experimental import pallas as pl
from jax.experimental.pallas import tpu as pltpu

_BN_EPS = 1e-5
_HALO = 8  # sublane-aligned top halo for the block-1 scratch
_VMEM_SPEC = pl.BlockSpec(memory_space=pltpu.MemorySpace.VMEM)


# ----------------------------------------------------------------------------
# Fused forward kernel (closure over static batch / length)
# ----------------------------------------------------------------------------
def _make_kernel(n, length):
    l2 = length // 2        # 6   (after pool 1)
    l3 = length // 4        # 3   (after pool 2)
    r1 = n * length         # conv-1 rows, ordered (sample, pos) pos-fastest
    r2 = n * l2             # conv-2 rows
    r3 = n * l3             # pooled-2 rows
    inv_r1 = 1.0 / r1
    inv_r2 = 1.0 / r2

    def kernel(xcol_ref, m2_ref, p1_ref, p2_ref, p3_ref, p4_ref, out_ref,
               y1h_ref, pext_ref, y2f_ref, p2f_ref):
        f32 = jnp.float32

        # ------------------------------------------------------------------
        # Block 1: Conv1d(1,16,k=3,p=1) as 3 VPU MACs on wrapper-built taps
        # (per-sample zero padding already baked into xcol -> no masks).
        # ------------------------------------------------------------------
        xl = xcol_ref[:, 0:1]                       # x[pos-1]  (tap k=0)
        xc = xcol_ref[:, 1:2]                       # x[pos]    (tap k=1)
        xr = xcol_ref[:, 2:3]                       # x[pos+1]  (tap k=2)
        w1_0 = p1_ref[0:1, :]
        w1_1 = p1_ref[1:2, :]
        w1_2 = p1_ref[2:3, :]
        b1 = p1_ref[3:4, :]
        g1 = p1_ref[4:5, :]
        be1 = p1_ref[5:6, :]

        y1 = xl * w1_0 + xc * w1_1 + xr * w1_2 + b1          # (r1, 16)
        y1 = jnp.maximum(y1, 0.0)                            # ReLU

        # BatchNorm1d(16): training-mode whole-batch stats, single pass.
        s1 = jnp.sum(y1, axis=0, keepdims=True)
        q1 = jnp.sum(y1 * y1, axis=0, keepdims=True)
        m1 = s1 * inv_r1
        v1 = jnp.maximum(q1 * inv_r1 - m1 * m1, 0.0)         # biased variance
        y1 = g1 * (y1 - m1) * jax.lax.rsqrt(v1 + _BN_EPS) + be1

        # Zero ONLY the halo rows that pooling reads (no full-scratch zero),
        # then one sublane-aligned store of the r1 live rows.
        y1h_ref[pl.ds(0, _HALO), :] = jnp.zeros((_HALO, 16), f32)
        y1h_ref[pl.ds(_HALO + r1, 2), :] = jnp.zeros((2, 16), f32)
        y1h_ref[pl.ds(_HALO, r1), :] = y1

        # ------------------------------------------------------------------
        # MaxPool1d(2) on block 1, extended by one pooled row on each side,
        # computed once (2 stride-2 reads) into a tiny scratch.
        # pext[t] = pooled[t-1] in packed (sample,pos) order; rows 0 and
        # r2+1 come from the zeroed halos.
        # ------------------------------------------------------------------
        pa = y1h_ref[pl.ds(_HALO - 2, r2 + 2, stride=2), :]
        pb = y1h_ref[pl.ds(_HALO - 1, r2 + 2, stride=2), :]
        pext_ref[...] = jnp.maximum(pa, pb)                  # (r2+2, 16)

        # ------------------------------------------------------------------
        # Block 2: Conv1d(16,32,k=3,p=1) as ONE K=48 MXU matmul.
        # lft/ctr/rgt are plain offset slices of pext; per-sample conv zero
        # padding is the precomputed keep-mask (values are finite -> *0 safe).
        # ------------------------------------------------------------------
        kl = m2_ref[:, 0:1]                                  # 0 where pos == 0
        kr = m2_ref[:, 1:2]                                  # 0 where pos == l2-1
        lft = pext_ref[pl.ds(0, r2), :] * kl
        ctr = pext_ref[pl.ds(1, r2), :]
        rgt = pext_ref[pl.ds(2, r2), :] * kr
        xcol2 = jnp.concatenate([lft, ctr, rgt], axis=1)     # (r2, 48)

        w2 = p2_ref[0:48, :]
        b2 = p2_ref[48:49, :]
        g2 = p2_ref[49:50, :]
        be2 = p2_ref[50:51, :]

        y2 = jnp.dot(xcol2, w2, preferred_element_type=f32) + b2
        y2 = jnp.maximum(y2, 0.0)                            # ReLU

        s2 = jnp.sum(y2, axis=0, keepdims=True)
        q2 = jnp.sum(y2 * y2, axis=0, keepdims=True)
        m2m = s2 * inv_r2
        v2 = jnp.maximum(q2 * inv_r2 - m2m * m2m, 0.0)
        y2 = g2 * (y2 - m2m) * jax.lax.rsqrt(v2 + _BN_EPS) + be2
        y2f_ref[...] = y2                                    # (r2, 32)

        # ------------------------------------------------------------------
        # MaxPool1d(2) on block 2 (stride-2 even/odd max, once), then
        # Flatten (folded into W3 row order) + Linear(96,64) as ONE K=96 dot.
        # ------------------------------------------------------------------
        qa = y2f_ref[pl.ds(0, r3, stride=2), :]
        qb = y2f_ref[pl.ds(1, r3, stride=2), :]
        p2f_ref[...] = jnp.maximum(qa, qb)                   # (r3, 32), rows (i, m)

        cols = [p2f_ref[pl.ds(m, n, stride=l3), :] for m in range(l3)]
        hcat = jnp.concatenate(cols, axis=1)                 # (n, 96) lane-dense

        w3 = p3_ref[0:l3 * 32, :]
        b3 = p3_ref[l3 * 32:l3 * 32 + 1, :]
        h = jnp.maximum(jnp.dot(hcat, w3, preferred_element_type=f32) + b3, 0.0)

        # Linear(64, num_classes), zero-padded to 128 lanes (lane-dense store)
        w4 = p4_ref[0:64, :]
        b4 = p4_ref[64:65, :]
        out_ref[...] = jnp.dot(h, w4, preferred_element_type=f32) + b4

    return kernel


# ----------------------------------------------------------------------------
# Wrapper: one pallas_call for the whole forward
# ----------------------------------------------------------------------------
@functools.partial(jax.jit, static_argnames=("num_classes",))
def emotion_cnn_forward(x, packed, num_classes=6):
    """x: (N, 1, 12) float32 -> logits (N, num_classes)."""
    n, cin, length = x.shape
    if cin != 1 or length != 12:
        raise ValueError("EmotionCNN requires input (N, 1, 12) (Linear(32*3, 64)).")
    l2, l3 = length // 2, length // 4
    r1, r2, r3 = n * length, n * l2, n * l3

    # conv-1 im2col (zero-padded taps), rows ordered (sample, pos) -> (r1, 3).
    x2d = x.reshape(n, length)
    xp = jnp.pad(x2d, ((0, 0), (1, 1)))
    xcol = jnp.stack([xp[:, 0:length], xp[:, 1:length + 1], xp[:, 2:length + 2]],
                     axis=-1).reshape(r1, 3)

    # conv-2 sample-edge keep-masks: static given n -> built host-side (no
    # in-kernel modulo).  col 0 keeps the left tap, col 1 the right tap.
    pos = np.arange(r2) % l2
    m2 = jnp.asarray(np.stack([(pos != 0), (pos != l2 - 1)], axis=1)
                     .astype(np.float32))

    out_lanes = packed["p4"].shape[1]

    # Rough physical VMEM footprint (every row occupies one 128-lane f32 tile)
    # -> explicit limit so v5e's 16 MiB default scope is not the ceiling.
    rows = (r1 + r2 + 6 + 51 + 97 + 65 + n            # inputs + output
            + (r1 + _HALO + 2) + (r2 + 2) + r2 + r3)  # scratches
    est_bytes = 512 * rows
    vmem_limit = int(min(48 * 2**20, max(16 * 2**20, 4 * est_bytes)))

    out = pl.pallas_call(
        _make_kernel(n, length),
        out_shape=jax.ShapeDtypeStruct((n, out_lanes), jnp.float32),
        in_specs=[_VMEM_SPEC] * 6,
        out_specs=_VMEM_SPEC,
        scratch_shapes=[
            pltpu.VMEM((_HALO + r1 + 2, 16), jnp.float32),  # conv-1 out + halos
            pltpu.VMEM((r2 + 2, 16), jnp.float32),          # pooled-1, extended
            pltpu.VMEM((r2, 32), jnp.float32),              # conv-2 out (pre-pool)
            pltpu.VMEM((r3, 32), jnp.float32),              # pooled-2
        ],
        compiler_params=pltpu.CompilerParams(vmem_limit_bytes=vmem_limit),
    )(xcol, m2, packed["p1"], packed["p2"], packed["p3"], packed["p4"])
    return out[:, :num_classes]


# ----------------------------------------------------------------------------
# Parameters: torch-native layouts + one-time packing for the kernel
# ----------------------------------------------------------------------------
def init_params(key, num_classes=6):
    """Random parameters in the PyTorch module's native layouts."""
    ks = jax.random.split(key, 6)
    f32 = jnp.float32
    return dict(
        w1=0.2 * jax.random.normal(ks[0], (16, 1, 3), f32),        # Conv1d(1,16,3)
        b1=0.05 * jax.random.normal(ks[1], (16,), f32),
        g1=jnp.ones((16,), f32), be1=jnp.zeros((16,), f32),        # BatchNorm1d(16)
        w2=0.1 * jax.random.normal(ks[2], (32, 16, 3), f32),       # Conv1d(16,32,3)
        b2=0.05 * jax.random.normal(ks[3], (32,), f32),
        g2=jnp.ones((32,), f32), be2=jnp.zeros((32,), f32),        # BatchNorm1d(32)
        w3=0.1 * jax.random.normal(ks[4], (64, 96), f32),          # Linear(96,64)
        b3=jnp.zeros((64,), f32),
        w4=0.1 * jax.random.normal(ks[5], (num_classes, 64), f32), # Linear(64,nc)
        b4=jnp.zeros((num_classes,), f32),
    )


def pack_params(p, lane_pad=128):
    """Torch-layout params -> packed, kernel-friendly tensors (trace-time only)."""
    f32 = jnp.float32
    # Block 1: rows = [w1 tap0; tap1; tap2; b1; gamma1; beta1]      -> (6, 16)
    w1 = jnp.transpose(p["w1"][:, 0, :])                            # [k, cout]
    p1 = jnp.concatenate([w1, p["b1"][None], p["g1"][None], p["be1"][None]], axis=0)
    # Block 2: one (48, 32) matrix, row order k*16 + cin (matches the
    # [lft | ctr | rgt] lane concat), plus b2/gamma2/beta2           -> (51, 32)
    w2 = jnp.transpose(p["w2"], (2, 1, 0)).reshape(48, 32)          # [k*16+cin, cout]
    p2 = jnp.concatenate([w2, p["b2"][None], p["g2"][None], p["be2"][None]], axis=0)
    # Head: fold torch channel-major flatten (f = c*3 + l) into W3 row order
    # (l*32 + c), append b3                                          -> (97, 64)
    w3_cl = jnp.transpose(p["w3"])                                  # (96,64), row c*3+l
    w3_lc = w3_cl.reshape(32, 3, 64).transpose(1, 0, 2).reshape(96, 64)
    p3 = jnp.concatenate([w3_lc, p["b3"][None]], axis=0)
    # Final layer zero-padded to `lane_pad` output columns (lane-dense store)
    nc = p["w4"].shape[0]
    w4 = jnp.zeros((64, lane_pad), f32).at[:, :nc].set(jnp.transpose(p["w4"]))
    b4 = jnp.zeros((1, lane_pad), f32).at[0, :nc].set(p["b4"])
    p4 = jnp.concatenate([w4, b4], axis=0)                          # (65, 128)
    return dict(p1=p1, p2=p2, p3=p3, p4=p4)


# ----------------------------------------------------------------------------
# Pure-JAX reference with PyTorch semantics (independent of kernel layouts)
# ----------------------------------------------------------------------------
def _ref_forward(x, p):
    hp = jax.lax.Precision.HIGHEST

    def conv1d(x, w, b):                        # x (N,C,L), w (O,I,3), pad=1
        y = jax.lax.conv_general_dilated(
            x, w, window_strides=(1,), padding=((1, 1),),
            dimension_numbers=("NCH", "OIH", "NCH"), precision=hp)
        return y + b[None, :, None]

    def bn_train(x, g, b):                      # stats over (N, L), biased var
        m = jnp.mean(x, axis=(0, 2), keepdims=True)
        v = jnp.mean((x - m) ** 2, axis=(0, 2), keepdims=True)
        return g[None, :, None] * (x - m) / jnp.sqrt(v + _BN_EPS) + b[None, :, None]

    def pool2(x):                               # MaxPool1d(2)
        n, c, L = x.shape
        return jnp.max(x.reshape(n, c, L // 2, 2), axis=-1)

    y = pool2(bn_train(jnp.maximum(conv1d(x, p["w1"], p["b1"]), 0.0), p["g1"], p["be1"]))
    y = pool2(bn_train(jnp.maximum(conv1d(y, p["w2"], p["b2"]), 0.0), p["g2"], p["be2"]))
    flat = y.reshape(y.shape[0], -1)            # torch Flatten (channel-major)
    h = jnp.maximum(jnp.dot(flat, p["w3"].T, precision=hp) + p["b3"], 0.0)
    return jnp.dot(h, p["w4"].T, precision=hp) + p["b4"]


if __name__ == "__main__":
    key = jax.random.PRNGKey(0)
    kx, kp = jax.random.split(key)

    # Length 12 -> 6 -> 3 through the two MaxPool1d(2), matching Linear(32*3, 64).
    x = jax.random.normal(kx, (2, 1, 12), jnp.float32)
    params = init_params(kp, num_classes=6)
    packed = pack_params(params)

    out = emotion_cnn_forward(x, packed, num_classes=6)
    out = jax.block_until_ready(out)

    ref = _ref_forward(x, params)
    assert out.shape == (2, 6), out.shape
    assert jnp.allclose(out, ref, rtol=5e-4, atol=5e-4), (out, ref)

    print("KERNEL_OK")
</pallas_src>

<mosaic_0001>
module attributes {stable_mosaic.version = 11 : i64} {
  func.func @kernel(%arg0: memref<24x3xf32, #tpu.memory_space<vmem>>, %arg1: memref<12x2xf32, #tpu.memory_space<vmem>>, %arg2: memref<6x16xf32, #tpu.memory_space<vmem>>, %arg3: memref<51x32xf32, #tpu.memory_space<vmem>>, %arg4: memref<97x64xf32, #tpu.memory_space<vmem>>, %arg5: memref<65x128xf32, #tpu.memory_space<vmem>>, %arg6: memref<2x128xf32, #tpu.memory_space<vmem>>, %arg7: memref<34x16xf32, #tpu.memory_space<vmem>>, %arg8: memref<14x16xf32, #tpu.memory_space<vmem>>, %arg9: memref<12x32xf32, #tpu.memory_space<vmem>>, %arg10: memref<6x32xf32, #tpu.memory_space<vmem>>) attributes {dimension_semantics = [], scalar_prefetch = 0 : i64, scratch_operands = 4 : i64, tpu.core_type = #tpu.core_type<tc>} {
    %c0 = arith.constant 0 : index
    %c0_0 = arith.constant 0 : index
    %0 = vector.load %arg0[%c0, %c0_0] : memref<24x3xf32, #tpu.memory_space<vmem>>, vector<24x1xf32>
    %c0_1 = arith.constant 0 : index
    %c1 = arith.constant 1 : index
    %1 = vector.load %arg0[%c0_1, %c1] : memref<24x3xf32, #tpu.memory_space<vmem>>, vector<24x1xf32>
    %c0_2 = arith.constant 0 : index
    %c2 = arith.constant 2 : index
    %2 = vector.load %arg0[%c0_2, %c2] : memref<24x3xf32, #tpu.memory_space<vmem>>, vector<24x1xf32>
    %c0_3 = arith.constant 0 : index
    %c0_4 = arith.constant 0 : index
    %3 = vector.load %arg2[%c0_3, %c0_4] : memref<6x16xf32, #tpu.memory_space<vmem>>, vector<1x16xf32>
    %c1_5 = arith.constant 1 : index
    %c0_6 = arith.constant 0 : index
    %4 = vector.load %arg2[%c1_5, %c0_6] : memref<6x16xf32, #tpu.memory_space<vmem>>, vector<1x16xf32>
    %c2_7 = arith.constant 2 : index
    %c0_8 = arith.constant 0 : index
    %5 = vector.load %arg2[%c2_7, %c0_8] : memref<6x16xf32, #tpu.memory_space<vmem>>, vector<1x16xf32>
    %c3 = arith.constant 3 : index
    %c0_9 = arith.constant 0 : index
    %6 = vector.load %arg2[%c3, %c0_9] : memref<6x16xf32, #tpu.memory_space<vmem>>, vector<1x16xf32>
    %c4 = arith.constant 4 : index
    %c0_10 = arith.constant 0 : index
    %7 = vector.load %arg2[%c4, %c0_10] : memref<6x16xf32, #tpu.memory_space<vmem>>, vector<1x16xf32>
    %c5 = arith.constant 5 : index
    %c0_11 = arith.constant 0 : index
    %8 = vector.load %arg2[%c5, %c0_11] : memref<6x16xf32, #tpu.memory_space<vmem>>, vector<1x16xf32>
    %9 = vector.broadcast %0 : vector<24x1xf32> to vector<24x16xf32>
    %10 = vector.broadcast %3 : vector<1x16xf32> to vector<24x16xf32>
    %11 = arith.mulf %9, %10 : vector<24x16xf32>
    %12 = vector.broadcast %1 : vector<24x1xf32> to vector<24x16xf32>
    %13 = vector.broadcast %4 : vector<1x16xf32> to vector<24x16xf32>
    %14 = arith.mulf %12, %13 : vector<24x16xf32>
    %15 = arith.addf %11, %14 : vector<24x16xf32>
    %16 = vector.broadcast %2 : vector<24x1xf32> to vector<24x16xf32>
    %17 = vector.broadcast %5 : vector<1x16xf32> to vector<24x16xf32>
    %18 = arith.mulf %16, %17 : vector<24x16xf32>
    %19 = arith.addf %15, %18 : vector<24x16xf32>
    %20 = vector.broadcast %6 : vector<1x16xf32> to vector<24x16xf32>
    %21 = arith.addf %19, %20 : vector<24x16xf32>
    %cst = arith.constant 0.000000e+00 : f32
    %22 = vector.broadcast %cst : f32 to vector<24x16xf32>
    %23 = arith.maximumf %21, %22 : vector<24x16xf32>
    %cst_12 = arith.constant dense<0.000000e+00> : vector<16xf32>
    %24 = vector.multi_reduction <add>, %23, %cst_12 [0] : vector<24x16xf32> to vector<16xf32>
    %25 = vector.shape_cast %24 : vector<16xf32> to vector<1x16xf32>
    %26 = arith.mulf %23, %23 : vector<24x16xf32>
    %cst_13 = arith.constant dense<0.000000e+00> : vector<16xf32>
    %27 = vector.multi_reduction <add>, %26, %cst_13 [0] : vector<24x16xf32> to vector<16xf32>
    %28 = vector.shape_cast %27 : vector<16xf32> to vector<1x16xf32>
    %cst_14 = arith.constant 0.0416666679 : f32
    %29 = vector.broadcast %cst_14 : f32 to vector<1x16xf32>
    %30 = arith.mulf %25, %29 : vector<1x16xf32>
    %cst_15 = arith.constant 0.0416666679 : f32
    %31 = vector.broadcast %cst_15 : f32 to vector<1x16xf32>
    %32 = arith.mulf %28, %31 : vector<1x16xf32>
    %33 = arith.mulf %30, %30 : vector<1x16xf32>
    %34 = arith.subf %32, %33 : vector<1x16xf32>
    %cst_16 = arith.constant 0.000000e+00 : f32
    %35 = vector.broadcast %cst_16 : f32 to vector<1x16xf32>
    %36 = arith.maximumf %34, %35 : vector<1x16xf32>
    %37 = vector.broadcast %30 : vector<1x16xf32> to vector<24x16xf32>
    %38 = arith.subf %23, %37 : vector<24x16xf32>
    %39 = vector.broadcast %7 : vector<1x16xf32> to vector<24x16xf32>
    %40 = arith.mulf %39, %38 : vector<24x16xf32>
    %cst_17 = arith.constant 9.99999974E-6 : f32
    %41 = vector.broadcast %cst_17 : f32 to vector<1x16xf32>
    %42 = arith.addf %36, %41 : vector<1x16xf32>
    %43 = math.rsqrt %42 : vector<1x16xf32>
    %44 = vector.broadcast %43 : vector<1x16xf32> to vector<24x16xf32>
    %45 = arith.mulf %40, %44 : vector<24x16xf32>
    %46 = vector.broadcast %8 : vector<1x16xf32> to vector<24x16xf32>
    %47 = arith.addf %45, %46 : vector<24x16xf32>
    %cst_18 = arith.constant 0.000000e+00 : f32
    %48 = vector.broadcast %cst_18 : f32 to vector<8x16xf32>
    %c0_19 = arith.constant 0 : index
    %c0_20 = arith.constant 0 : index
    %49 = vector.load %arg7[%c0_19, %c0_20] : memref<34x16xf32, #tpu.memory_space<vmem>>, vector<8x16xf32>
    tpu.vector_store %arg7[%c0_19, %c0_20], %48 {strides = array<i32>} : memref<34x16xf32, #tpu.memory_space<vmem>>, vector<8x16xf32>,
    %cst_21 = arith.constant 0.000000e+00 : f32
    %50 = vector.broadcast %cst_21 : f32 to vector<2x16xf32>
    %c32 = arith.constant 32 : index
    %c0_22 = arith.constant 0 : index
    %51 = vector.load %arg7[%c32, %c0_22] : memref<34x16xf32, #tpu.memory_space<vmem>>, vector<2x16xf32>
    tpu.vector_store %arg7[%c32, %c0_22], %50 {strides = array<i32>} : memref<34x16xf32, #tpu.memory_space<vmem>>, vector<2x16xf32>,
    %c8 = arith.constant 8 : index
    %c0_23 = arith.constant 0 : index
    %52 = vector.load %arg7[%c8, %c0_23] : memref<34x16xf32, #tpu.memory_space<vmem>>, vector<24x16xf32>
    tpu.vector_store %arg7[%c8, %c0_23], %47 {strides = array<i32>} : memref<34x16xf32, #tpu.memory_space<vmem>>, vector<24x16xf32>,
    %c6 = arith.constant 6 : index
    %c0_24 = arith.constant 0 : index
    %53 = tpu.strided_load %arg7[%c6, %c0_24] {strides = array<i32: 2, 1>} : memref<34x16xf32, #tpu.memory_space<vmem>>, vector<14x16xf32>
    %c7 = arith.constant 7 : index
    %c0_25 = arith.constant 0 : index
    %54 = tpu.strided_load %arg7[%c7, %c0_25] {strides = array<i32: 2, 1>} : memref<34x16xf32, #tpu.memory_space<vmem>>, vector<14x16xf32>
    %55 = arith.maximumf %53, %54 : vector<14x16xf32>
    %c0_26 = arith.constant 0 : index
    %c0_27 = arith.constant 0 : index
    %56 = vector.load %arg8[%c0_26, %c0_27] : memref<14x16xf32, #tpu.memory_space<vmem>>, vector<14x16xf32>
    tpu.vector_store %arg8[%c0_26, %c0_27], %55 {strides = array<i32>} : memref<14x16xf32, #tpu.memory_space<vmem>>, vector<14x16xf32>,
    %c0_28 = arith.constant 0 : index
    %c0_29 = arith.constant 0 : index
    %57 = vector.load %arg1[%c0_28, %c0_29] : memref<12x2xf32, #tpu.memory_space<vmem>>, vector<12x1xf32>
    %c0_30 = arith.constant 0 : index
    %c1_31 = arith.constant 1 : index
    %58 = vector.load %arg1[%c0_30, %c1_31] : memref<12x2xf32, #tpu.memory_space<vmem>>, vector<12x1xf32>
    %c0_32 = arith.constant 0 : index
    %c0_33 = arith.constant 0 : index
    %59 = vector.load %arg8[%c0_32, %c0_33] : memref<14x16xf32, #tpu.memory_space<vmem>>, vector<12x16xf32>
    %60 = vector.broadcast %57 : vector<12x1xf32> to vector<12x16xf32>
    %61 = arith.mulf %59, %60 : vector<12x16xf32>
    %c1_34 = arith.constant 1 : index
    %c0_35 = arith.constant 0 : index
    %62 = vector.load %arg8[%c1_34, %c0_35] : memref<14x16xf32, #tpu.memory_space<vmem>>, vector<12x16xf32>
    %c2_36 = arith.constant 2 : index
    %c0_37 = arith.constant 0 : index
    %63 = vector.load %arg8[%c2_36, %c0_37] : memref<14x16xf32, #tpu.memory_space<vmem>>, vector<12x16xf32>
    %64 = vector.broadcast %58 : vector<12x1xf32> to vector<12x16xf32>
    %65 = arith.mulf %63, %64 : vector<12x16xf32>
    %66 = tpu.concatenate %61, %62, %65 in 1 : vector<12x16xf32>, vector<12x16xf32>, vector<12x16xf32> -> vector<12x48xf32>
    %c0_38 = arith.constant 0 : index
    %c0_39 = arith.constant 0 : index
    %67 = vector.load %arg3[%c0_38, %c0_39] : memref<51x32xf32, #tpu.memory_space<vmem>>, vector<48x32xf32>
    %c48 = arith.constant 48 : index
    %c0_40 = arith.constant 0 : index
    %68 = vector.load %arg3[%c48, %c0_40] : memref<51x32xf32, #tpu.memory_space<vmem>>, vector<1x32xf32>
    %c49 = arith.constant 49 : index
    %c0_41 = arith.constant 0 : index
    %69 = vector.load %arg3[%c49, %c0_41] : memref<51x32xf32, #tpu.memory_space<vmem>>, vector<1x32xf32>
    %c50 = arith.constant 50 : index
    %c0_42 = arith.constant 0 : index
    %70 = vector.load %arg3[%c50, %c0_42] : memref<51x32xf32, #tpu.memory_space<vmem>>, vector<1x32xf32>
    %cst_43 = arith.constant dense<0.000000e+00> : vector<12x32xf32>
    %71 = tpu.matmul %66, %67, %cst_43 {dimension_numbers = #tpu.dot_dimension_numbers<[1], [0], [0], [1], [0, 0, 1, 1], [], []>} : vector<12x48xf32>, vector<48x32xf32>, vector<12x32xf32> -> vector<12x32xf32>
    %72 = vector.broadcast %68 : vector<1x32xf32> to vector<12x32xf32>
    %73 = arith.addf %71, %72 : vector<12x32xf32>
    %cst_44 = arith.constant 0.000000e+00 : f32
    %74 = vector.broadcast %cst_44 : f32 to vector<12x32xf32>
    %75 = arith.maximumf %73, %74 : vector<12x32xf32>
    %cst_45 = arith.constant dense<0.000000e+00> : vector<32xf32>
    %76 = vector.multi_reduction <add>, %75, %cst_45 [0] : vector<12x32xf32> to vector<32xf32>
    %77 = vector.shape_cast %76 : vector<32xf32> to vector<1x32xf32>
    %78 = arith.mulf %75, %75 : vector<12x32xf32>
    %cst_46 = arith.constant dense<0.000000e+00> : vector<32xf32>
    %79 = vector.multi_reduction <add>, %78, %cst_46 [0] : vector<12x32xf32> to vector<32xf32>
    %80 = vector.shape_cast %79 : vector<32xf32> to vector<1x32xf32>
    %cst_47 = arith.constant 0.0833333358 : f32
    %81 = vector.broadcast %cst_47 : f32 to vector<1x32xf32>
    %82 = arith.mulf %77, %81 : vector<1x32xf32>
    %cst_48 = arith.constant 0.0833333358 : f32
    %83 = vector.broadcast %cst_48 : f32 to vector<1x32xf32>
    %84 = arith.mulf %80, %83 : vector<1x32xf32>
    %85 = arith.mulf %82, %82 : vector<1x32xf32>
    %86 = arith.subf %84, %85 : vector<1x32xf32>
    %cst_49 = arith.constant 0.000000e+00 : f32
    %87 = vector.broadcast %cst_49 : f32 to vector<1x32xf32>
    %88 = arith.maximumf %86, %87 : vector<1x32xf32>
    %89 = vector.broadcast %82 : vector<1x32xf32> to vector<12x32xf32>
    %90 = arith.subf %75, %89 : vector<12x32xf32>
    %91 = vector.broadcast %69 : vector<1x32xf32> to vector<12x32xf32>
    %92 = arith.mulf %91, %90 : vector<12x32xf32>
    %cst_50 = arith.constant 9.99999974E-6 : f32
    %93 = vector.broadcast %cst_50 : f32 to vector<1x32xf32>
    %94 = arith.addf %88, %93 : vector<1x32xf32>
    %95 = math.rsqrt %94 : vector<1x32xf32>
    %96 = vector.broadcast %95 : vector<1x32xf32> to vector<12x32xf32>
    %97 = arith.mulf %92, %96 : vector<12x32xf32>
    %98 = vector.broadcast %70 : vector<1x32xf32> to vector<12x32xf32>
    %99 = arith.addf %97, %98 : vector<12x32xf32>
    %c0_51 = arith.constant 0 : index
    %c0_52 = arith.constant 0 : index
    %100 = vector.load %arg9[%c0_51, %c0_52] : memref<12x32xf32, #tpu.memory_space<vmem>>, vector<12x32xf32>
    tpu.vector_store %arg9[%c0_51, %c0_52], %99 {strides = array<i32>} : memref<12x32xf32, #tpu.memory_space<vmem>>, vector<12x32xf32>,
    %c0_53 = arith.constant 0 : index
    %c0_54 = arith.constant 0 : index
    %101 = tpu.strided_load %arg9[%c0_53, %c0_54] {strides = array<i32: 2, 1>} : memref<12x32xf32, #tpu.memory_space<vmem>>, vector<6x32xf32>
    %c1_55 = arith.constant 1 : index
    %c0_56 = arith.constant 0 : index
    %102 = tpu.strided_load %arg9[%c1_55, %c0_56] {strides = array<i32: 2, 1>} : memref<12x32xf32, #tpu.memory_space<vmem>>, vector<6x32xf32>
    %103 = arith.maximumf %101, %102 : vector<6x32xf32>
    %c0_57 = arith.constant 0 : index
    %c0_58 = arith.constant 0 : index
    %104 = vector.load %arg10[%c0_57, %c0_58] : memref<6x32xf32, #tpu.memory_space<vmem>>, vector<6x32xf32>
    tpu.vector_store %arg10[%c0_57, %c0_58], %103 {strides = array<i32>} : memref<6x32xf32, #tpu.memory_space<vmem>>, vector<6x32xf32>,
    %c0_59 = arith.constant 0 : index
    %c0_60 = arith.constant 0 : index
    %105 = tpu.strided_load %arg10[%c0_59, %c0_60] {strides = array<i32: 3, 1>} : memref<6x32xf32, #tpu.memory_space<vmem>>, vector<2x32xf32>
    %c1_61 = arith.constant 1 : index
    %c0_62 = arith.constant 0 : index
    %106 = tpu.strided_load %arg10[%c1_61, %c0_62] {strides = array<i32: 3, 1>} : memref<6x32xf32, #tpu.memory_space<vmem>>, vector<2x32xf32>
    %c2_63 = arith.constant 2 : index
    %c0_64 = arith.constant 0 : index
    %107 = tpu.strided_load %arg10[%c2_63, %c0_64] {strides = array<i32: 3, 1>} : memref<6x32xf32, #tpu.memory_space<vmem>>, vector<2x32xf32>
    %108 = tpu.concatenate %105, %106, %107 in 1 : vector<2x32xf32>, vector<2x32xf32>, vector<2x32xf32> -> vector<2x96xf32>
    %c0_65 = arith.constant 0 : index
    %c0_66 = arith.constant 0 : index
    %109 = vector.load %arg4[%c0_65, %c0_66] : memref<97x64xf32, #tpu.memory_space<vmem>>, vector<96x64xf32>
    %c96 = arith.constant 96 : index
    %c0_67 = arith.constant 0 : index
    %110 = vector.load %arg4[%c96, %c0_67] : memref<97x64xf32, #tpu.memory_space<vmem>>, vector<1x64xf32>
    %cst_68 = arith.constant dense<0.000000e+00> : vector<2x64xf32>
    %111 = tpu.matmul %108, %109, %cst_68 {dimension_numbers = #tpu.dot_dimension_numbers<[1], [0], [0], [1], [0, 0, 1, 1], [], []>} : vector<2x96xf32>, vector<96x64xf32>, vector<2x64xf32> -> vector<2x64xf32>
    %112 = vector.broadcast %110 : vector<1x64xf32> to vector<2x64xf32>
    %113 = arith.addf %111, %112 : vector<2x64xf32>
    %cst_69 = arith.constant 0.000000e+00 : f32
    %114 = vector.broadcast %cst_69 : f32 to vector<2x64xf32>
    %115 = arith.maximumf %113, %114 : vector<2x64xf32>
    %c0_70 = arith.constant 0 : index
    %c0_71 = arith.constant 0 : index
    %116 = vector.load %arg5[%c0_70, %c0_71] : memref<65x128xf32, #tpu.memory_space<vmem>>, vector<64x128xf32>
    %c64 = arith.constant 64 : index
    %c0_72 = arith.constant 0 : index
    %117 = vector.load %arg5[%c64, %c0_72] : memref<65x128xf32, #tpu.memory_space<vmem>>, vector<1x128xf32>
    %cst_73 = arith.constant dense<0.000000e+00> : vector<2x128xf32>
    %118 = tpu.matmul %115, %116, %cst_73 {dimension_numbers = #tpu.dot_dimension_numbers<[1], [0], [0], [1], [0, 0, 1, 1], [], []>} : vector<2x64xf32>, vector<64x128xf32>, vector<2x128xf32> -> vector<2x128xf32>
    %119 = vector.broadcast %117 : vector<1x128xf32> to vector<2x128xf32>
    %120 = arith.addf %118, %119 : vector<2x128xf32>
    %c0_74 = arith.constant 0 : index
    %c0_75 = arith.constant 0 : index
    %121 = vector.load %arg6[%c0_74, %c0_75] : memref<2x128xf32, #tpu.memory_space<vmem>>, vector<2x128xf32>
    tpu.vector_store %arg6[%c0_74, %c0_75], %120 {strides = array<i32>} : memref<2x128xf32, #tpu.memory_space<vmem>>, vector<2x128xf32>,
    return
  }
}

</mosaic_0001>

<bundles_post_ra>
// kernel: emotion_cnn_forward.1
= control target key start
LH: loop header
LB: loop body
LE: loop exit
PB: predicated region body
PF: predicated region fallthrough
CT: control target
= control target key end

     0   :  { %v785_v1 = vmov 1   ;;  %v786_v2 = vmov 0   ;;  %s1009_s0 = inlined_call_operand.vmem [shape: f32[24,3], index: 0, kind: input, shape index: {}]   ;;  %s1010_s1 = inlined_call_operand.vmem [shape: f32[12,2], index: 1, kind: input, shape index: {}]   ;;  %s1011_s2 = inlined_call_operand.vmem [shape: f32[6,16], index: 2, kind: input, shape index: {}]   ;;  %s1012_s3 = inlined_call_operand.vmem [shape: f32[51,32], index: 3, kind: input, shape index: {}]   ;;  %s1013_s4 = inlined_call_operand.vmem [shape: f32[97,64], index: 4, kind: input, shape index: {}]   ;;  %s1014_s5 = inlined_call_operand.vmem [shape: f32[65,128], index: 5, kind: input, shape index: {}]   ;;  %s1015_s6 = inlined_call_operand.hbm [shape: f32[2,128], index: 6, kind: output, shape index: {}]  }
   0x1   :  { %v24_v0 = vld [vmem:[%s1009_s0] sm:$0xff]  ;;  %749 = vset.pattern.permute.xlu1 %v785_v1  ;;  %748 = vset.pattern.permute.xlu0 %v786_v2 }
   0x2   :  { %56 = vperm.xlu1 %749, %v24_v0   ;;  %35 = vperm.xlu0 %748, %v24_v0  }
   0x3   :  { %11 = vsyncpa [#allocation7], 0  ;;  %v25_v3 = vld [vmem:[%s1009_s0 + $0x8] sm:$0xff]  ;;  %v26_v4 = vld [vmem:[%s1009_s0 + $0x10] sm:$0xff]  ;;  %v787_v5 = vmov 2   ;;  %vm109_vm0 = vcmask 130048  }
   0x4   :  { %v181_v6 = vld [vmem:[%s1010_s1] sm:$0xff]  ;;  %v182_v7 = vld [vmem:[%s1010_s1 + $0x8] sm:$0xf]  ;;  %vm163_vm1 = vcmask 123904   ;;  %v788_v8 = vmov 0.0   ;;  %vm179_vm2 = vcmask 128000  }
   0x5   :  { %164 = vst.msk [vmem:[#allocation2 + $0x20] sm:$0x3] %vm163_vm1, %v788_v8  ;;  %v232_v9 = vld [vmem:[%s1012_s3] sm:$0xff]  ;;  %v233_v10 = vld [vmem:[%s1012_s3 + $0x8] sm:$0xff]  ;;  %s789_s28 = smov 16   ;;  %s790_s29 = smov 32  }
   0x6   :  { %60 = vperm.xlu1 %749, %v25_v3   ;;  %40 = vperm.xlu0 %748, %v25_v3   ;;  %162 = vst.msk [vmem:[#allocation2] sm:$0xff] %vm109_vm0, %v788_v8  ;;  %v696_v11 = vpack.c.bf16 %v233_v10, %v232_v9  ;;  %v591_v16 = vld [vmem:[%s1011_s2 + $0x1] ss:$0 sm:$0xff]  ;;  %v590_v17 = vld [vmem:[%s1011_s2] ss:$0 sm:$0xff]  ;;  %vm229_vm3 = vcmask 261120  }
   0x7   :  { %v592_v24 = vld [vmem:[%s1011_s2 + $0x2] ss:$0 sm:$0xff]  ;;  %v593_v33 = vld [vmem:[%s1011_s2 + $0x3] ss:$0 sm:$0xff]  ;;  %vm245_vm4 = vcmask 392192   ;;  %vm330_vm5 = vcmask 257024  }
   0x8   :  { %697 = vmatprep.subr.bf16.mxu0 %v696_v11  ;;  %vm379_vm6 = vcmask 259072   ;;  %vm792_vm7 = vmmov 0   ;;  %s793_s19 = smov 64   ;;  %vm395_vm8 = vcmask 523264   ;;  %vm414_vm9 = vcmask 785408   ;;  %s794_s26 = smov [#allocation6]  }
   0x9   :  { %699 = vmatpush3.bf16.msra.mxu0 %v696_v11  ;;  %674 = vmatprep.mubr.msk.f32.mxu1 %vm792_vm7, %v788_v8  ;;  %s582_s27 = sshll.u32 %s794_s26, 4  ;;  %s583_s27 = int_to_ptr.vmem [resolvable:$true] %s582_s27 }
   0xa   :  { %64 = vperm.xlu1 %749, %v26_v4   ;;  %45 = vperm.xlu0 %748, %v26_v4   ;;  %p766_p1 = scmp.lt.s32.totalorder %s583_s27, %s583_s27 }
   0xe   :  { %751 = vset.pattern.permute.xlu1 %v787_v5  ;;  %750 = vset.pattern.permute.xlu0 %v787_v5 }
   0xf   :  { %82 = vperm.xlu1 %751, %v25_v3   ;;  %78 = vperm.xlu0 %750, %v24_v0  }
  0x13   :  { %86 = vperm.xlu1 %751, %v26_v4   ;;  %752 = vset.pattern.permute.xlu0 %v785_v1 }
  0x14   :  { %202 = vperm.xlu0 %752, %v181_v6  }
  0x17   :  { %753 = vset.pattern.permute.xlu1 %v785_v1 }
  0x18   :  { %206 = vperm.xlu1 %753, %v182_v7   ;;  %755 = vset.pattern.permute.xlu0 %v786_v2 }
  0x19   :  { %192 = vperm.xlu0 %755, %v182_v7  }
  0x1c   :  { %754 = vset.pattern.permute.xlu1 %v786_v2 }
  0x1d   :  { %187 = vperm.xlu1 %754, %v181_v6   ;;  %756 = vset.pattern.permute.xlu0 %v785_v1 }
  0x81   :  { %v57_v12 = vpop.permute.xlu1 %56  ;;  %v36_v13 = vpop.permute.xlu0 %35 }
  0x82   :  { %v71_v20 = vmul.f32 %v591_v16, %v57_v12  ;;  %v52_v21 = vmul.f32 %v590_v17, %v36_v13 }
  0x84   :  { %v74_v25 = vadd.f32 %v71_v20, %v52_v21 }
  0x85   :  { %v61_v14 = vpop.permute.xlu1 %60  ;;  %v41_v15 = vpop.permute.xlu0 %40 }
  0x86   :  { %v72_v22 = vmul.f32 %v591_v16, %v61_v14  ;;  %v53_v23 = vmul.f32 %v590_v17, %v41_v15 }
  0x88   :  { %v75_v26 = vadd.f32 %v72_v22, %v53_v23  ;;  %v595_v22 = vld [vmem:[%s1011_s2 + $0x5] ss:$0 sm:$0xff] }
  0x89   :  { %v65_v18 = vpop.permute.xlu1 %64  ;;  %v46_v19 = vpop.permute.xlu0 %45 }
  0x8a   :  { %v73_v29 = vmul.f32 %v591_v16, %v65_v18  ;;  %v54_v30 = vmul.f32 %v590_v17, %v46_v19  ;;  %v594_v17 = vld [vmem:[%s1011_s2 + $0x4] ss:$0 sm:$0xff] }
  0x8c   :  { %v76_v37 = vadd.f32 %v73_v29, %v54_v30  ;;  %v234_v29 = vld [vmem:[%s1012_s3 + $0x10] sm:$0xff]  ;;  %v235_v30 = vld [vmem:[%s1012_s3 + $0x18] sm:$0xff] }
  0x8e   :  { %v83_v27 = vpop.permute.xlu1 %82  ;;  %v79_v28 = vpop.permute.xlu0 %78 }
  0x8f   :  { %v94_v31 = vmul.f32 %v592_v24, %v83_v27  ;;  %v93_v32 = vmul.f32 %v592_v24, %v79_v28 }
  0x91   :  { %v97_v34 = vadd.f32 %v94_v31, %v75_v26  ;;  %v96_v35 = vadd.f32 %v93_v32, %v74_v25  ;;  %v700_v31 = vpack.c.bf16 %v235_v30, %v234_v29 }
  0x92   :  { %v87_v36 = vpop.permute.xlu1 %86 }
  0x93   :  { %v104_v38 = vadd.f32 %v593_v33, %v97_v34  ;;  %v103_v39 = vadd.f32 %v593_v33, %v96_v35  ;;  %v95_v40 = vmul.f32 %v592_v24, %v87_v36  ;;  %701 = vmatprep.subr.bf16.mxu0 %v700_v31 }
  0x94   :  { %703 = vmatpush3.bf16.msra.mxu0 %v700_v31 }
  0x95   :  { %v107_v41 = vmax.f32 %v104_v38, 0.0  ;;  %v106_v42 = vmax.f32 %v103_v39, 0.0  ;;  %v98_v43 = vadd.f32 %v95_v40, %v76_v37  ;;  %v236_v38 = vld [vmem:[%s1012_s3 + $0x20] sm:$0xff]  ;;  %v237_v39 = vld [vmem:[%s1012_s3 + $0x28] sm:$0xff] }
  0x96   :  { %v704_v40 = vpack.c.bf16 %v237_v39, %v236_v38 }
  0x97   :  { %v122_v44 = vmul.f32 %v107_v41, %v107_v41  ;;  %v121_v45 = vmul.f32 %v106_v42, %v106_v42  ;;  %v111_v46 = vsel %vm109_vm0, %v107_v41, 0.0  ;;  %v110_v47 = vsel %vm109_vm0, %v106_v42, 0.0 }
  0x98   :  { %v105_v48 = vadd.f32 %v593_v33, %v98_v43  ;;  %v112_v52 = vadd.f32 %v111_v46, %v110_v47  ;;  %705 = vmatprep.subr.bf16.mxu0 %v704_v40  ;;  %v207_v47 = vpop.permute.xlu1 %206 }
  0x99   :  { %v125_v49 = vsel %vm109_vm0, %v122_v44, 0.0  ;;  %v124_v50 = vsel %vm109_vm0, %v121_v45, 0.0  ;;  %707 = vmatpush3.bf16.msra.mxu0 %v704_v40 }
  0x9a   :  { %v108_v51 = vmax.f32 %v105_v48, 0.0  ;;  %v126_v55 = vadd.f32 %v125_v49, %v124_v50 }
  0x9c   :  { %v113_v53 = vsel %vm109_vm0, %v108_v51, 0.0  ;;  %v123_v54 = vmul.f32 %v108_v51, %v108_v51  ;;  %v188_v49 = vpop.permute.xlu1 %187 }
  0x9d   :  { %v114_v56 = vadd.f32 %v113_v53, %v112_v52 }
  0x9e   :  { %v127_v57 = vsel %vm109_vm0, %v123_v54, 0.0 }
  0x9f   :  { %v115_v58 = vrot.slane %v114_v56, 4  ;;  %v128_v59 = vadd.f32 %v127_v57, %v126_v55 }
  0xa1   :  { %v116_v60 = vadd.f32 %v115_v58, %v114_v56  ;;  %v129_v61 = vrot.slane %v128_v59, 4 }
  0xa3   :  { %v117_v62 = vrot.slane %v116_v60, 2  ;;  %v130_v63 = vadd.f32 %v129_v61, %v128_v59 }
  0xa5   :  { %v118_v0 = vadd.f32 %v117_v62, %v116_v60  ;;  %v131_v1 = vrot.slane %v130_v63, 2 }
  0xa7   :  { %v119_v2 = vrot.slane %v118_v0, 1  ;;  %v132_v3 = vadd.f32 %v131_v1, %v130_v63  ;;  %v397_v63 = vld [vmem:[%s1013_s4] sm:$0xff]  ;;  %v399_v1 = vld [vmem:[%s1013_s4 + $0x10] sm:$0xff] }
  0xa9   :  { %v120_v4 = vadd.f32 %v119_v2, %v118_v0  ;;  %v133_v5 = vrot.slane %v132_v3, 1  ;;  %v398_v0 = vld [vmem:[%s1013_s4 + $0x8] sm:$0xff]  ;;  %v791_v2 = vmov 0.0|0.0  }
  0xaa   :  { %708 = vmatprep.subr.bf16.mxu1 %v791_v2  ;;  %726 = vmatprep.subr.bf16.mxu0 %v791_v2 }
  0xab   :  { %v134_v6 = vadd.f32 %v133_v5, %v132_v3  ;;  %v135_v7 = vmul.f32 0.041666668, %v120_v4  ;;  %v709_v3 = vpack.c.bf16 %v398_v0, %v397_v63  ;;  %v400_v4 = vld [vmem:[%s1013_s4 + $0x18] sm:$0xff] }
  0xac   :  { %v712_v5 = vpack.c.bf16 %v400_v4, %v399_v1  ;;  %v490_v4 = vld [vmem:[%s1014_s5 + $0x8] sm:$0xff] }
  0xad   :  { %v136_v9 = vmul.f32 0.041666668, %v134_v6  ;;  %v137_v10 = vmul.f32 %v135_v7, %v135_v7  ;;  %v140_v14 = vsub.f32 %v106_v42, %v135_v7  ;;  %v141_v15 = vsub.f32 %v107_v41, %v135_v7  ;;  %v203_v42 = vpop.permute.xlu0 %202  ;;  %710 = vmatpush3.bf16.msra.mxu1 %v709_v3  ;;  %v401_v6 = vld [vmem:[%s1013_s4 + $0x20] sm:$0xff] }
  0xae   :  { %v142_v16 = vsub.f32 %v108_v51, %v135_v7  ;;  %711 = vmatprep.subr.bf16.mxu1 %v791_v2  ;;  %v402_v7 = vld [vmem:[%s1013_s4 + $0x28] sm:$0xff]  ;;  %v489_v3 = vld [vmem:[%s1014_s5] sm:$0xff] }
  0xaf   :  { %v138_v11 = vsub.f32 %v136_v9, %v137_v10  ;;  %v147_v18 = vmul.f32 %v594_v17, %v140_v14  ;;  %v148_v19 = vmul.f32 %v594_v17, %v141_v15  ;;  %v715_v9 = vpack.c.bf16 %v402_v7, %v401_v6  ;;  %v403_v10 = vld [vmem:[%s1013_s4 + $0x30] sm:$0xff]  ;;  %v406_v14 = vld [vmem:[%s1013_s4 + $0x48] sm:$0xff] }
  0xb0   :  { %v149_v20 = vmul.f32 %v594_v17, %v142_v16  ;;  %v407_v16 = vld [vmem:[%s1013_s4 + $0x50] sm:$0xff]  ;;  %v408_v17 = vld [vmem:[%s1013_s4 + $0x58] sm:$0xff]  ;;  %v727_v6 = vpack.c.bf16 %v490_v4, %v489_v3 }
  0xb1   :  { %v139_v12 = vmax.f32 %v138_v11, 0.0  ;;  %v193_v51 = vpop.permute.xlu0 %192  ;;  %713 = vmatpush3.bf16.msra.mxu1 %v712_v5  ;;  %v404_v11 = vld [vmem:[%s1013_s4 + $0x38] sm:$0xff]  ;;  %v491_v5 = vld [vmem:[%s1014_s5 + $0x10] sm:$0xff] }
  0xb2   :  { %714 = vmatprep.subr.bf16.mxu1 %v791_v2 }
  0xb3   :  { %v150_v13 = vadd.f32 1e-05, %v139_v12  ;;  %v718_v12 = vpack.c.bf16 %v404_v11, %v403_v10  ;;  %v494_v10 = vld [vmem:[%s1014_s5 + $0x28] sm:$0xff] }
  0xb5   :  { %757 = vrsqrt.f32 %v150_v13  ;;  %716 = vmatpush3.bf16.msra.mxu1 %v715_v9  ;;  %v405_v13 = vld [vmem:[%s1013_s4 + $0x40] sm:$0xff] }
  0xb6   :  { %717 = vmatprep.subr.bf16.mxu1 %v791_v2  ;;  %v721_v15 = vpack.c.bf16 %v406_v14, %v405_v13  ;;  %v493_v9 = vld [vmem:[%s1014_s5 + $0x20] sm:$0xff] }
  0xb7   :  { %v733_v11 = vpack.c.bf16 %v494_v10, %v493_v9 }
  0xb9   :  { %719 = vmatpush3.bf16.msra.mxu1 %v718_v12 }
  0xba   :  { %720 = vmatprep.subr.bf16.mxu1 %v791_v2 }
  0xbd   :  { %722 = vmatpush3.bf16.msra.mxu1 %v721_v15 }
  0xbe   :  { %723 = vmatprep.subr.bf16.mxu1 %v791_v2 }
  0xbf   :  { %v758_v21 = vpop.eup %757 }
  0xc0   :  { %v152_v23 = vmul.f32 %v758_v21, %v147_v18  ;;  %v153_v24 = vmul.f32 %v758_v21, %v148_v19  ;;  %v154_v25 = vmul.f32 %v758_v21, %v149_v20  ;;  %v724_v18 = vpack.c.bf16 %v408_v17, %v407_v16  ;;  %v596_v19 = vld [vmem:[%s1012_s3 + $0x30] ss:$0 sm:$0xff] }
  0xc2   :  { %v159_v26 = vadd.f32 %v595_v22, %v152_v23  ;;  %v160_v27 = vadd.f32 %v595_v22, %v153_v24  ;;  %v161_v28 = vadd.f32 %v595_v22, %v154_v25  ;;  %725 = vmatpush3.bf16.msra.mxu1 %v724_v18 }
  0xc4   :  { %165 = vst.msk [vmem:[#allocation2 + $0x8] sm:$0xff] %vm109_vm0, %v159_v26  ;;  %166 = vst.msk [vmem:[#allocation2 + $0x10] sm:$0xff] %vm109_vm0, %v160_v27 }
  0xc5   :  { %167 = vst.msk [vmem:[#allocation2 + $0x18] sm:$0xff] %vm109_vm0, %v161_v28 }
  0xcb   :  { %v169_v35 = vld [vmem:[#allocation2 + $0x6] ss:$2 sm:$0xff]  ;;  %v173_v36 = vld [vmem:[#allocation2 + $0x7] ss:$2 sm:$0xff] }
  0xcc   :  { %v171_v32 = vld [vmem:[#allocation2 + $0x16] ss:$2 sm:$0x3f]  ;;  %v175_v33 = vld [vmem:[#allocation2 + $0x17] ss:$2 sm:$0x3f]  ;;  %v176_v37 = vmax.f32 %v169_v35, %v173_v36 }
  0xcd   :  { %v177_v34 = vmax.f32 %v171_v32, %v175_v33 }
  0xce   :  { %178 = vst.msk [vmem:[#allocation3] sm:$0xff] %vm109_vm0, %v176_v37 }
  0xcf   :  { %180 = vst.msk [vmem:[#allocation3 + $0x8] sm:$0x3f] %vm179_vm2, %v177_v34 }
  0xd5   :  { %v183_v50 = vld [vmem:[#allocation3] sm:$0xff] }
  0xd6   :  { %v199_v41 = vld [vmem:[#allocation3 + $0x2] sm:$0xff]  ;;  %v200_v45 = vld [vmem:[#allocation3 + $0xa] sm:$0xf]  ;;  %v195_v52 = vmul.f32 %v188_v49, %v183_v50 }
  0xd7   :  { %v197_v43 = vld [vmem:[#allocation3 + $0x1] sm:$0xff]  ;;  %v209_v44 = vmul.f32 %v203_v42, %v199_v41  ;;  %v198_v46 = vld [vmem:[#allocation3 + $0x9] sm:$0xf]  ;;  %v210_v48 = vmul.f32 %v207_v47, %v200_v45 }
  0xd8   :  { %213 = vrot.lane.b32.xlu1 %v197_v43, %s789_s28  ;;  %v184_v56 = vld [vmem:[#allocation3 + $0x8] sm:$0xf] }
  0xd9   :  { %221 = vrot.lane.b32.xlu0 %v209_v44, %s790_s29  ;;  %v196_v59 = vmul.f32 %v193_v51, %v184_v56 }
  0xdc   :  { %215 = vrot.lane.b32.xlu1 %v198_v46, %s789_s28  ;;  %s761_s28 = scalar_lea.vmem %s583_s27, 32 }
  0xdd   :  { %p762_p0 = scmp.ne.s32.totalorder %s583_s27, %s761_s28  ;;  %p767_p2 = scmp.lt.s32.totalorder %s761_s28, %s761_s28 }
  0xdf   :  { %p768_p3 = por %p767_p2, %p766_p1 }
  0xe0   :  { %223 = vrot.lane.b32.xlu1 %v210_v48, %s790_s29 }
  0xe1   :  { %p769_p4 = pnand %p768_p3, %p762_p0 }
 0x14a   :  { %v214_v53 = vpop.permute.xlu1 %213 }
 0x14b   :  { %v227_v54 = vsel %vm109_vm0, %v195_v52, %v214_v53  ;;  %v222_v55 = vpop.permute.xlu0 %221 }
 0x14c   :  { %v230_v57 = vsel %vm229_vm3, %v227_v54, %v222_v55  ;;  %v599_v54 = vld [vmem:[%s1012_s3 + $0x31] ss:$0 sm:$0xff] }
 0x14d   :  { %647 = vmatprep.mubr.msk.f32.mxu0 %vm245_vm4, %v230_v57 }
 0x14e   :  { %v216_v58 = vpop.permute.xlu1 %215 }
 0x14f   :  { %v228_v60 = vsel %vm109_vm0, %v196_v59, %v216_v58  ;;  %v600_v58 = vld [vmem:[%s1012_s3 + $0x32] ss:$0 sm:$0xff] }
 0x152   :  { %v224_v61 = vpop.permute.xlu1 %223 }
 0x153   :  { %v231_v62 = vsel %vm229_vm3, %v228_v60, %v224_v61 }
 0x154   :  { %648 = vmatmul.mubr.msk.f32.vlgmr.msra.gmra.mrb[0].mxu0 %vm245_vm4, %v231_v62 }
 0x155   :  { %693 = vmatprep.mubr.msk.f32.mxu0 %vm792_vm7, %v788_v8  ;;  %v492_v8 = vld [vmem:[%s1014_s5 + $0x18] sm:$0xff]  ;;  %728 = vmatpush3.bf16.msra.mxu0 %v727_v6 }
 0x156   :  { %v730_v7 = vpack.c.bf16 %v492_v8, %v491_v5  ;;  %729 = vmatprep.subr.bf16.mxu0 %v791_v2 }
 0x159   :  { %731 = vmatpush3.bf16.msra.mxu0 %v730_v7 }
 0x15a   :  { %732 = vmatprep.subr.bf16.mxu0 %v791_v2 }
 0x15d   :  { %734 = vmatpush3.bf16.msra.mxu0 %v733_v11 }
 0x15e   :  { %735 = vmatprep.subr.bf16.mxu0 %v791_v2  ;;  %v601_v2 = vld [vmem:[%s1013_s4 + $0x60] ss:$0 sm:$0xff] }
 0x227   :  { %v649_v20 = vpop.f32.mrb[0].mxu0 }
 0x228   :  { %v324_v21 = vadd.f32 %v649_v20, %v596_v19  ;;  %v318_v22 = vpop.f32.mrb[1].mxu0  ;;  %v496_v20 = vld [vmem:[%s1014_s5 + $0x38] sm:$0xff] }
 0x229   :  { %v319_v23 = vadd.f32 %v596_v19, %v318_v22  ;;  %v495_v19 = vld [vmem:[%s1014_s5 + $0x30] sm:$0xff] }
 0x22a   :  { %v328_v24 = vmax.f32 %v324_v21, 0.0  ;;  %v736_v21 = vpack.c.bf16 %v496_v20, %v495_v19 }
 0x22b   :  { %v327_v25 = vmax.f32 %v319_v23, 0.0 }
 0x22c   :  { %v331_v26 = vsel %vm330_vm5, %v328_v24, 0.0  ;;  %v340_v27 = vmul.f32 %v328_v24, %v328_v24  ;;  %737 = vmatpush3.bf16.msra.mxu0 %v736_v21 }
 0x22d   :  { %v329_v28 = vsel %vm229_vm3, %v327_v25, 0.0  ;;  %v339_v29 = vmul.f32 %v327_v25, %v327_v25 }
 0x22e   :  { %v342_v30 = vsel %vm330_vm5, %v340_v27, 0.0  ;;  %v332_v31 = vadd.f32 %v331_v26, %v329_v28  ;;  %v603_v26 = vld [vmem:[%s1014_s5 + $0x40] ss:$0 sm:$0xff] }
 0x22f   :  { %v341_v32 = vsel %vm229_vm3, %v339_v29, 0.0 }
 0x230   :  { %v333_v33 = vrot.slane %v332_v31, 4  ;;  %v343_v34 = vadd.f32 %v342_v30, %v341_v32 }
 0x232   :  { %v334_v35 = vadd.f32 %v333_v33, %v332_v31  ;;  %v344_v36 = vrot.slane %v343_v34, 4 }
 0x234   :  { %v335_v37 = vrot.slane %v334_v35, 2  ;;  %v345_v38 = vadd.f32 %v344_v36, %v343_v34 }
 0x236   :  { %v336_v39 = vadd.f32 %v335_v37, %v334_v35  ;;  %v346_v40 = vrot.slane %v345_v38, 2 }
 0x238   :  { %v337_v41 = vrot.slane %v336_v39, 1  ;;  %v347_v42 = vadd.f32 %v346_v40, %v345_v38 }
 0x23a   :  { %v338_v43 = vadd.f32 %v337_v41, %v336_v39  ;;  %v348_v44 = vrot.slane %v347_v42, 1 }
 0x23c   :  { %v349_v45 = vadd.f32 %v348_v44, %v347_v42  ;;  %v350_v46 = vmul.f32 0.083333336, %v338_v43 }
 0x23e   :  { %v351_v47 = vmul.f32 0.083333336, %v349_v45  ;;  %v352_v48 = vmul.f32 %v350_v46, %v350_v46  ;;  %v355_v49 = vsub.f32 %v327_v25, %v350_v46  ;;  %v356_v50 = vsub.f32 %v328_v24, %v350_v46 }
 0x240   :  { %v353_v51 = vsub.f32 %v351_v47, %v352_v48  ;;  %v361_v55 = vmul.f32 %v599_v54, %v355_v49  ;;  %v362_v56 = vmul.f32 %v599_v54, %v356_v50 }
 0x242   :  { %v354_v52 = vmax.f32 %v353_v51, 0.0 }
 0x244   :  { %v363_v53 = vadd.f32 1e-05, %v354_v52 }
 0x246   :  { %759 = vrsqrt.f32 %v363_v53 }
 0x250   :  { %v760_v57 = vpop.eup %759 }
 0x251   :  { %v365_v59 = vmul.f32 %v760_v57, %v361_v55  ;;  %v366_v60 = vmul.f32 %v760_v57, %v362_v56 }
 0x253   :  { %v371_v61 = vadd.f32 %v600_v58, %v365_v59  ;;  %v372_v62 = vadd.f32 %v600_v58, %v366_v60 }
 0x255   :  { %373 = vst.msk [vmem:[#allocation4] sm:$0xff] %vm229_vm3, %v371_v61 }
 0x256   :  { %374 = vst.msk [vmem:[#allocation4 + $0x8] sm:$0xf] %vm330_vm5, %v372_v62 }
 0x25d   :  { %v375_v63 = vld [vmem:[#allocation4] ss:$2 sm:$0x3f]  ;;  %v377_v0 = vld [vmem:[#allocation4 + $0x1] ss:$2 sm:$0x3f] }
 0x25e   :  { %v378_v1 = vmax.f32 %v375_v63, %v377_v0 }
 0x260   :  { %380 = vst.msk [vmem:[#allocation5] sm:$0x3f] %vm379_vm6, %v378_v1 }
 0x267   :  { %v385_v12 = vld [vmem:[#allocation5 + $0x2] ss:$3 sm:$0x3]  ;;  %v383_v13 = vld [vmem:[#allocation5 + $0x1] ss:$3 sm:$0x3] }
 0x268   :  { %391 = vrot.lane.b32.xlu1 %v385_v12, %s793_s19  ;;  %387 = vrot.lane.b32.xlu0 %v383_v13, %s790_s29  ;;  %v381_v16 = vld [vmem:[#allocation5] ss:$3 sm:$0x3] }
 0x2da   :  { %v392_v14 = vpop.permute.xlu1 %391  ;;  %v388_v15 = vpop.permute.xlu0 %387 }
 0x2db   :  { %v394_v17 = vsel %vm229_vm3, %v381_v16, %v388_v15 }
 0x2dc   :  { %v396_v18 = vsel %vm395_vm8, %v394_v17, %v392_v14 }
 0x2dd   :  { %675 = vmatmul.mubr.msk.f32.vlgmr.msra.gmra.mrb[0].mxu1 %vm414_vm9, %v396_v18 }
 0x3b0   :  { %v484_v22 = vpop.f32.mrb[0].mxu1 }
 0x3b1   :  { %v485_v23 = vadd.f32 %v601_v2, %v484_v22  ;;  %v676_v24 = vpop.f32.mrb[1].mxu1 }
 0x3b3   :  { %v488_v25 = vmax.f32 %v485_v23, 0.0 }
 0x3b5   :  { %694 = vmatmul.mubr.msk.f32.vlgmr.msra.gmra.mrb[2].mxu0 %vm395_vm8, %v488_v25 }
 0x488   :  { %v571_v27 = vpop.f32.mrb[2].mxu0 }
 0x489   :  { %v572_v28 = vadd.f32 %v603_v26, %v571_v27  ;;  %v695_v29 = vpop.f32.mrb[3].mxu0 }
 0x48b   :  { %575 = vst [vmem:[#allocation6] sm:$0x3] %v572_v28 }
 0x48c   :  { %772 = shalt.err (!%p769_p4)
}
 0x48d   :  { %s773_s0 = scalar_lea.hbm %s1015_s6, 32 }
 0x48e   :  { %p774_p5 = scmp.ne.s32.totalorder %s1015_s6, %s773_s0  ;;  %p777_p6 = scmp.lt.u32.totalorder %s773_s0, %s1015_s6 }
 0x490   :  { %p779_p7 = pnand %p777_p6, %p774_p5 }
 0x492   :  { %782 = shalt.err (!%p779_p7)
}
 0x493   :  { %585 = dma.vmem_to_hbm [thread:$0]  %s583_s27, 32, %s1015_s6, [#allocation7]  }
 0x494   :  { %783 = dma.done.wait [#allocation7], 32  }
 0x495   :  { %784 = vsyncadd [#allocation7], 4294967264 }
 0x496   :  { %589 = vsyncpa [#allocation7], 1 }

</bundles_post_ra>
